<compile_context>
chip_gen: v5e
topology: v5e:2x2
jax: 0.10.0
libtpu: 0.0.40
codegen_flags: <defaults>
</compile_context>

<pallas_src>
import functools
import math

import jax
import jax.numpy as jnp
from jax.experimental import pallas as pl
from jax.experimental.pallas import tpu as pltpu


def _round_up(a, b):
    return ((a + b - 1) // b) * b


def _cdiv(a, b):
    return (a + b - 1) // b


def label_smoothing_kernel(x_ref, tgt_ref, col_ref, smooth_ref, out_ref, *,
                           confidence, padding_idx):
    """Accumulate per-shard partial sums of (true_dist * x).

    x_ref      : (tg, sub, Vp)  log-probs (f32 or bf16)
    tgt_ref    : (tg, sub, 1)   int32 labels
    col_ref    : (1, 1, Vp)     int32 column ids (VMEM-resident constant)
    smooth_ref : (1, 1, Vp)     smooth weights in x dtype (0 at pad col / padded cols)
    out_ref    : (1, sub, Vp)   f32 per-shard partials (output block used as accumulator)
    """
    inner = pl.program_id(1)

    @pl.when(inner == 0)
    def _():
        out_ref[...] = jnp.zeros_like(out_ref)

    x = x_ref[...]                                       # stays in input dtype
    tgt = tgt_ref[...]                                   # (tg, sub, 1) int32

    # ~4 VALU ops per element: cmp + select + 2 muls (t*log(t) hoisted to the wrapper).
    w = jnp.where(col_ref[...] == tgt,
                  jnp.array(confidence, dtype=x.dtype),
                  smooth_ref[...])                       # (tg, sub, Vp), x dtype
    row_valid = (tgt != padding_idx).astype(jnp.float32)  # (tg, sub, 1), tiny
    contrib = (w * x) * row_valid                        # promoted to f32 here

    # Reduce only along the leading vreg-group axis: pure vector adds, no XLU.
    out_ref[...] += jnp.sum(contrib, axis=0, keepdims=True)


def label_smoothing_loss(x, target, *, size, padding_idx, smoothing,
                         num_shards=2, max_tm=2048):
    """x: (N, size) float32/bfloat16 log-probs; target: (N,) int. Returns scalar f32."""
    n, v = x.shape
    assert v == size
    if smoothing > 0.0:
        assert size > 2, "smoothing > 0 requires size > 2 (matches PyTorch division)"

    if x.dtype not in (jnp.float32, jnp.bfloat16):
        x = x.astype(jnp.float32)
    itemsize = jnp.dtype(x.dtype).itemsize
    sub = max(8, 32 // itemsize)          # native sublane packing: f32 -> 8, bf16 -> 16

    confidence = 1.0 - smoothing
    smooth_val = (smoothing / (size - 2)) if smoothing > 0.0 else 0.0
    tlogt_conf = float(confidence * math.log(confidence)) if confidence > 0.0 else 0.0
    tlogt_smooth = float(smooth_val * math.log(smooth_val)) if smooth_val > 0.0 else 0.0
    # Per valid row, sum over the nonzero true_dist entries of t*log(t) is a constant.
    c_row = tlogt_conf + (size - 2) * tlogt_smooth

    v_pad = max(128, _round_up(v, 128))   # lane-dense vocab

    # Generation-aware VMEM sizing (128 MiB v5e/v6e, 64 MiB per-TC v7x).
    try:
        vmem_cap = int(pltpu.get_tpu_info().vmem_capacity_bytes)
    except Exception:
        vmem_cap = 64 * 1024 * 1024
    vmem_cap = max(vmem_cap, 32 * 1024 * 1024)
    vmem_limit = (vmem_cap * 3) // 4

    # Row tile from the VMEM budget: 2x double-buffered x + tgt, 2x accumulator block,
    # resident constants, plus compiler slack.
    acc_bytes = sub * v_pad * 4
    resident_bytes = v_pad * (4 + itemsize)
    margin = 2 * 1024 * 1024
    avail = max(vmem_limit - 2 * acc_bytes - 2 * resident_bytes - margin,
                2 * sub * (v_pad * itemsize + 4))
    per_row_bytes = v_pad * itemsize + 4
    tm_vmem = max(sub, (avail // (2 * per_row_bytes)) // sub * sub)

    rows_per_shard_req = max(1, _cdiv(n, num_shards))
    # Keep >= ~4 inner steps per shard when rows allow so DMA overlaps compute.
    tm_pipe = max(sub, _round_up(_cdiv(rows_per_shard_req, 4), sub))
    tm = int(max(sub, min(tm_vmem, max_tm, tm_pipe)))

    rows_per_shard = _round_up(rows_per_shard_req, tm)
    inner_grid = rows_per_shard // tm
    n_pad = num_shards * rows_per_shard
    tg = tm // sub

    # Pad rows/cols with zeros; padded rows get target = padding_idx -> masked exactly.
    x_p = x
    if (n_pad != n) or (v_pad != v):
        x_p = jnp.pad(x, ((0, n_pad - n), (0, v_pad - v)))
    tgt = target.astype(jnp.int32)
    if n_pad != n:
        tgt = jnp.pad(tgt, (0, n_pad - n), constant_values=padding_idx)

    # Free (contiguous) reshapes so the in-kernel reduction is over a leading axis only.
    x3 = x_p.reshape(n_pad // sub, sub, v_pad)
    tgt3 = tgt.reshape(n_pad // sub, sub, 1)

    # Static column data, VMEM-resident across the whole grid.
    col3 = jnp.arange(v_pad, dtype=jnp.int32).reshape(1, 1, v_pad)
    col_scale = (col3 != padding_idx) & (col3 < size)
    smooth3 = jnp.where(col_scale, smooth_val, 0.0).astype(x.dtype)

    kernel = functools.partial(
        label_smoothing_kernel,
        confidence=float(confidence),
        padding_idx=int(padding_idx),
    )

    bytes_accessed = int(x3.size * itemsize + tgt3.size * 4 + col3.size * 4
                         + smooth3.size * itemsize + num_shards * sub * v_pad * 4)
    cost = pl.CostEstimate(flops=int(5 * n_pad * v_pad),
                           transcendentals=0,
                           bytes_accessed=bytes_accessed)

    partials = pl.pallas_call(
        kernel,
        out_shape=jax.ShapeDtypeStruct((num_shards, sub, v_pad), jnp.float32),
        grid_spec=pltpu.PrefetchScalarGridSpec(
            num_scalar_prefetch=0,
            grid=(num_shards, inner_grid),
            in_specs=[
                pl.BlockSpec((tg, sub, v_pad),
                             lambda s, i: (s * inner_grid + i, 0, 0)),
                pl.BlockSpec((tg, sub, 1),
                             lambda s, i: (s * inner_grid + i, 0, 0)),
                pl.BlockSpec((1, 1, v_pad), lambda s, i: (0, 0, 0)),
                pl.BlockSpec((1, 1, v_pad), lambda s, i: (0, 0, 0)),
            ],
            out_specs=pl.BlockSpec((1, sub, v_pad), lambda s, i: (s, 0, 0)),
        ),
        compiler_params=pltpu.CompilerParams(
            dimension_semantics=("parallel", "arbitrary"),
            vmem_limit_bytes=int(vmem_limit),
        ),
        cost_estimate=cost,
    )(x3, tgt3, col3, smooth3)

    # loss = sum(t*log t) - sum(t*x) = n_valid * C_row - kernel partial sum.
    n_valid = jnp.sum((target != padding_idx).astype(jnp.float32))
    return jnp.asarray(c_row, dtype=jnp.float32) * n_valid - jnp.sum(partials)


def _reference(x, target, *, size, padding_idx, smoothing):
    """Pure-JAX reference reproducing the PyTorch forward exactly."""
    n, v = x.shape
    confidence = 1.0 - smoothing
    col = jnp.arange(v)[None, :]
    tgt = target[:, None]
    true_dist = jnp.full((n, v), smoothing / (size - 2), dtype=jnp.float32)
    true_dist = jnp.where(col == tgt, confidence, true_dist)
    true_dist = jnp.where(col == padding_idx, 0.0, true_dist)
    true_dist = jnp.where(tgt == padding_idx, 0.0, true_dist)
    contrib = jnp.where(true_dist > 0.0,
                        true_dist * (jnp.log(jnp.maximum(true_dist, 1e-30)) - x),
                        0.0)
    return jnp.sum(contrib)


if __name__ == "__main__":
    SIZE = 32          # vocab / class count
    N = 16             # number of tokens (non-multiple-of-tile shapes also work)
    PADDING_IDX = 0
    SMOOTHING = 0.1

    key = jax.random.PRNGKey(0)
    kx, kt = jax.random.split(key)
    logits = jax.random.normal(kx, (N, SIZE), dtype=jnp.float32)
    x = jax.nn.log_softmax(logits, axis=-1)            # module expects log-probs
    target = jax.random.randint(kt, (N,), 0, SIZE, dtype=jnp.int32)
    # Make a couple of rows padding to exercise the row-masking path.
    target = target.at[3].set(PADDING_IDX).at[11].set(PADDING_IDX)

    loss = label_smoothing_loss(
        x, target, size=SIZE, padding_idx=PADDING_IDX, smoothing=SMOOTHING)
    loss = jax.block_until_ready(loss)

    ref = _reference(x, target, size=SIZE, padding_idx=PADDING_IDX,
                     smoothing=SMOOTHING)
    assert jnp.allclose(loss, ref, rtol=1e-5, atol=1e-4), (loss, ref)

    # TODO(synk): the module also stores self.true_dist as a side effect; the full
    # (N, size) true_dist tensor is never materialized here (loss-only forward).
    print("KERNEL_OK")
</pallas_src>

<mosaic_0001>
module attributes {stable_mosaic.version = 11 : i64} {
  func.func @label_smoothing_kernel(%arg0: i32, %arg1: i32, %arg2: memref<1x8x128xf32, #tpu.memory_space<vmem>>, %arg3: memref<1x8x1xi32, #tpu.memory_space<vmem>>, %arg4: memref<1x1x128xi32, #tpu.memory_space<vmem>>, %arg5: memref<1x1x128xf32, #tpu.memory_space<vmem>>, %arg6: memref<1x8x128xf32, #tpu.memory_space<vmem>>) attributes {dimension_semantics = [#tpu.dimension_semantics<parallel>, #tpu.dimension_semantics<arbitrary>], iteration_bounds = array<i64: 2, 1>, scalar_prefetch = 0 : i64, scratch_operands = 0 : i64, tpu.core_type = #tpu.core_type<tc>, window_params = [{transform_indices = @transform_0, window_bounds = array<i64: 1, 8, 128>}, {transform_indices = @transform_1, window_bounds = array<i64: 1, 8, 1>}, {pipeline_mode = #tpu.pipeline_mode<synchronous>, transform_indices = @transform_2, window_bounds = array<i64: 1, 1, 128>}, {pipeline_mode = #tpu.pipeline_mode<synchronous>, transform_indices = @transform_3, window_bounds = array<i64: 1, 1, 128>}, {transform_indices = @transform_4, window_bounds = array<i64: 1, 8, 128>}]} {
    %c0_i32 = arith.constant 0 : i32
    %0 = arith.cmpi eq, %arg1, %c0_i32 : i32
    %1 = arith.extui %0 : i1 to i32
    %c0_i32_0 = arith.constant 0 : i32
    %2 = arith.cmpi ne, %1, %c0_i32_0 : i32
    scf.if %2 {
      %cst_20 = arith.constant 0.000000e+00 : f32
      %26 = vector.broadcast %cst_20 : f32 to vector<1x8x128xf32>
      %c0_21 = arith.constant 0 : index
      %c0_22 = arith.constant 0 : index
      %c0_23 = arith.constant 0 : index
      %27 = vector.load %arg6[%c0_21, %c0_22, %c0_23] : memref<1x8x128xf32, #tpu.memory_space<vmem>>, vector<1x8x128xf32>
      tpu.vector_store %arg6[%c0_21, %c0_22, %c0_23], %26 {strides = array<i32>} : memref<1x8x128xf32, #tpu.memory_space<vmem>>, vector<1x8x128xf32>,
    } else {
    }
    %c0 = arith.constant 0 : index
    %c0_1 = arith.constant 0 : index
    %c0_2 = arith.constant 0 : index
    %3 = vector.load %arg2[%c0, %c0_1, %c0_2] : memref<1x8x128xf32, #tpu.memory_space<vmem>>, vector<1x8x128xf32>
    %c0_3 = arith.constant 0 : index
    %c0_4 = arith.constant 0 : index
    %c0_5 = arith.constant 0 : index
    %4 = vector.load %arg3[%c0_3, %c0_4, %c0_5] : memref<1x8x1xi32, #tpu.memory_space<vmem>>, vector<1x8x1xi32>
    %c0_6 = arith.constant 0 : index
    %c0_7 = arith.constant 0 : index
    %c0_8 = arith.constant 0 : index
    %5 = vector.load %arg4[%c0_6, %c0_7, %c0_8] : memref<1x1x128xi32, #tpu.memory_space<vmem>>, vector<1x1x128xi32>
    %6 = vector.broadcast %5 : vector<1x1x128xi32> to vector<1x8x128xi32>
    %7 = vector.broadcast %4 : vector<1x8x1xi32> to vector<1x8x128xi32>
    %8 = arith.cmpi eq, %6, %7 : vector<1x8x128xi32>
    %c0_9 = arith.constant 0 : index
    %c0_10 = arith.constant 0 : index
    %c0_11 = arith.constant 0 : index
    %9 = vector.load %arg5[%c0_9, %c0_10, %c0_11] : memref<1x1x128xf32, #tpu.memory_space<vmem>>, vector<1x1x128xf32>
    %cst = arith.constant 0.899999976 : f32
    %10 = vector.broadcast %cst : f32 to vector<1x8x128xf32>
    %11 = vector.shape_cast %9 : vector<1x1x128xf32> to vector<1x1x128xf32>
    %12 = vector.broadcast %11 : vector<1x1x128xf32> to vector<1x8x128xf32>
    %13 = arith.select %8, %10, %12 : vector<1x8x128xi1>, vector<1x8x128xf32>
    %c0_i32_12 = arith.constant 0 : i32
    %14 = vector.broadcast %c0_i32_12 : i32 to vector<1x8x1xi32>
    %15 = arith.cmpi ne, %4, %14 : vector<1x8x1xi32>
    %16 = arith.extui %15 : vector<1x8x1xi1> to vector<1x8x1xi32>
    %17 = arith.sitofp %16 : vector<1x8x1xi32> to vector<1x8x1xf32>
    %18 = arith.mulf %13, %3 : vector<1x8x128xf32>
    %19 = vector.broadcast %17 : vector<1x8x1xf32> to vector<1x8x128xf32>
    %20 = arith.mulf %18, %19 : vector<1x8x128xf32>
    %c0_13 = arith.constant 0 : index
    %c0_14 = arith.constant 0 : index
    %c0_15 = arith.constant 0 : index
    %21 = vector.load %arg6[%c0_13, %c0_14, %c0_15] : memref<1x8x128xf32, #tpu.memory_space<vmem>>, vector<1x8x128xf32>
    %cst_16 = arith.constant dense<0.000000e+00> : vector<8x128xf32>
    %22 = vector.multi_reduction <add>, %20, %cst_16 [0] : vector<1x8x128xf32> to vector<8x128xf32>
    %23 = vector.shape_cast %22 : vector<8x128xf32> to vector<1x8x128xf32>
    %24 = arith.addf %21, %23 : vector<1x8x128xf32>
    %c0_17 = arith.constant 0 : index
    %c0_18 = arith.constant 0 : index
    %c0_19 = arith.constant 0 : index
    %25 = vector.load %arg6[%c0_17, %c0_18, %c0_19] : memref<1x8x128xf32, #tpu.memory_space<vmem>>, vector<1x8x128xf32>
    tpu.vector_store %arg6[%c0_17, %c0_18, %c0_19], %24 {strides = array<i32>} : memref<1x8x128xf32, #tpu.memory_space<vmem>>, vector<1x8x128xf32>,
    return
  }
  func.func @transform_0(%arg0: i32, %arg1: i32) -> (i32, i32, i32) {
    %c1_i32 = arith.constant 1 : i32
    %0 = arith.muli %arg0, %c1_i32 : i32
    %1 = arith.addi %0, %arg1 : i32
    %c0_i32 = arith.constant 0 : i32
    %c0_i32_0 = arith.constant 0 : i32
    %c0_i32_1 = arith.constant 0 : i32
    return %1, %c0_i32, %c0_i32_0 : i32, i32, i32
  }
  func.func @transform_1(%arg0: i32, %arg1: i32) -> (i32, i32, i32) {
    %c1_i32 = arith.constant 1 : i32
    %0 = arith.muli %arg0, %c1_i32 : i32
    %1 = arith.addi %0, %arg1 : i32
    %c0_i32 = arith.constant 0 : i32
    %c0_i32_0 = arith.constant 0 : i32
    %c0_i32_1 = arith.constant 0 : i32
    return %1, %c0_i32, %c0_i32_0 : i32, i32, i32
  }
  func.func @transform_2(%arg0: i32, %arg1: i32) -> (i32, i32, i32) {
    %c0_i32 = arith.constant 0 : i32
    %c0_i32_0 = arith.constant 0 : i32
    %c0_i32_1 = arith.constant 0 : i32
    %c0_i32_2 = arith.constant 0 : i32
    return %c0_i32, %c0_i32_0, %c0_i32_1 : i32, i32, i32
  }
  func.func @transform_3(%arg0: i32, %arg1: i32) -> (i32, i32, i32) {
    %c0_i32 = arith.constant 0 : i32
    %c0_i32_0 = arith.constant 0 : i32
    %c0_i32_1 = arith.constant 0 : i32
    %c0_i32_2 = arith.constant 0 : i32
    return %c0_i32, %c0_i32_0, %c0_i32_1 : i32, i32, i32
  }
  func.func @transform_4(%arg0: i32, %arg1: i32) -> (i32, i32, i32) {
    %c0_i32 = arith.constant 0 : i32
    %c0_i32_0 = arith.constant 0 : i32
    %c0_i32_1 = arith.constant 0 : i32
    return %arg0, %c0_i32, %c0_i32_0 : i32, i32, i32
  }
}

</mosaic_0001>

<bundles_post_ra>
// kernel: tpu_custom_call.1
= control target key start
LH: loop header
LB: loop body
LE: loop exit
PB: predicated region body
PF: predicated region fallthrough
CT: control target
= control target key end

     0   :  { %9 = vsyncpa [#allocation3], 0  ;;  %s649_s0 = inlined_call_operand.vmem [shape: f32[2,8,128], index: 0, kind: input, shape index: {}]   ;;  %s650_s1 = inlined_call_operand.vmem [shape: s32[2,8,1], index: 1, kind: input, shape index: {}]   ;;  %s651_s2 = inlined_call_operand.vmem [shape: s32[1,1,128], index: 2, kind: input, shape index: {}]   ;;  %s652_s3 = inlined_call_operand.vmem [shape: f32[1,1,128], index: 3, kind: input, shape index: {}]   ;;  %s653_s4 = inlined_call_operand.hbm [shape: f32[2,8,128], index: 4, kind: output, shape index: {}]  }
   0x1   :  { %11 = vsyncpa [#allocation3 + $0x1], 0  ;;  %s543_s15 = smov 0   ;;  %s545_s16 = smov 0  }
   0x2   :  { %s547_s17 = smov 0   ;;  %s549_s18 = smov 0  }
   0x3   :  { %s551_s19 = smov 0   ;;  %s553_s20 = smov 0  }
   0x4 LB: > { %s363_s21 = sadd.s32 4294967295, %s514_s20   ;;  %s364_s22 = sadd.s32 4294967294, %s514_s20   ;;  %s514_s20 = sphi %s553_s20, %s17_s20   ;;  %s510_s19 = sphi %s551_s19, %s660_s19   ;;  %s506_s18 = sphi %s549_s18, %s659_s18   ;;  %s502_s17 = sphi %s547_s17, %s658_s17   ;;  %s498_s16 = sphi %s545_s16, %s657_s16   ;;  %s494_s15 = sphi %s543_s15, %s656_s15  }
   0x5   : > { %s29_s23 = sadd.s32 1, %s510_s19  ;;  %s134_s24 = sadd.s32 1, %s502_s17 }
   0x6   : > { %p31_p0 = scmp.ge.s32.totalorder %s29_s23, 2  ;;  %p144_p1 = scmp.ne.s32.totalorder %s502_s17, %s498_s16 }
   0x7   : > { %p145_p2 = scmp.eq.s32.totalorder %s363_s21, 1  ;;  %p150_p3 = scmp.ne.s32.totalorder %s498_s16, %s494_s15 }
   0x8   : > { %s662_s23 = smov (%p31_p0, %s29_s23), 0  ;;  %p151_p5 = scmp.eq.s32.totalorder %s364_s22, 1 }
   0x9   : > { %p583_p4 = por %p145_p2, %p144_p1  ;;  %s131_s26 = ssub.s32 %s510_s19, %s662_s23 }
   0xa   : > { %p367_p6 = scmp.ge.s32.totalorder %s514_s20, 1  ;;  %p132_p7 = scmp.eq.s32.totalorder %s131_s26, 0 }
   0xb   : > { %p590_p8 = por %p151_p5, %p150_p3  ;;  %p193_p9 = scmp.lt.s32.totalorder %s514_s20, 3 }
   0xc   : > { %s596_s28 = scalar_select %p132_p7, %s502_s17, %s134_s24  }
   0xd   : > { %p194_p10 = pnand %p367_p6, %p193_p9 }
   0xe   : > { %p225_p11 = scmp.lt.s32.totalorder (!%p194_p10), %s506_s18, 1  ;;  %s221_s10 = sand.u32 (!%p194_p10), 1, %s498_s16  }
   0xf   : > { %197 = sbr.rel (%p194_p10) target bundleno = 153 (0x99), region = 36  ;;  %s368_s22 = sshll.u32 (!%p194_p10), %s221_s10, 3 }
  0x10   : > { %s373_s24 = sshll.u32 (!%p194_p10), %s506_s18, 3  ;;  %s223_s6 = scalar_lea.vmem (!%p194_p10), [#allocation2], %s368_s22 }
  0x11   : > { %s279_s5 = scalar_lea.hbm (!%p194_p10), %s653_s4, %s373_s24  ;;  %s456_s13 = scalar_lea.hbm (!%p194_p10), %s653_s4, 16 }
  0x12   : > { %s283_s8 = sshll.u32 (!%p194_p10), %s279_s5, 4  ;;  %s284_s8 = int_to_ptr.hbm [resolvable:$true] %s283_s8 }
  0x13   : > { %s450_s9 = sshra.s32 (!%p194_p10), %s284_s8, 4  ;;  %s451_s9 = int_to_ptr.hbm [resolvable:$true] %s450_s9 }
  0x14   : > { %v516_v0 = vmov 0   ;;  %s226_s29 = scalar_select %p225_p11, %s506_s18, 1  ;;  %v517_v2 = vmov 0.0   ;;  %v434_v4 = vld [vmem:[%s651_s2] ss:$0 sm:$0xff] }
  0x15   : > { %433 = vset.pattern.permute.xlu0 %v516_v0  ;;  %v435_v5 = vld [vmem:[%s652_s3] ss:$0 sm:$0xff]  ;;  %s452_s18 = scalar_lea.hbm %s451_s9, 8  ;;  %p457_p1 = scmp.lt.s32.totalorder %s451_s9, %s653_s4 }
  0x16   : > { %s369_s30 = sshll.u32 %s226_s29, 3  ;;  %p453_p12 = scmp.ne.s32.totalorder %s451_s9, %s452_s18 }
  0x17   : > { %s234_s7 = scalar_lea.vmem %s650_s1, %s369_s30  ;;  %s228_s21 = scalar_lea.vmem %s649_s0, %s369_s30 }
  0x18   : > { %v242_v1 = vld [vmem:[%s234_s7] sm:$0xff]  ;;  %s281_s7 = sshll.u32 %s223_s6, 4  ;;  %s269_s30 = scalar_lea.sflag [#allocation3], %s221_s10  ;;  %s282_s7 = int_to_ptr.vmem [resolvable:$true] %s281_s7 }
  0x19   : > { %246 = vperm.xlu0 %433, %v242_v1   ;;  %vm254_vm0 = vcmp.ne.s32.totalorder %v242_v1, 0  ;;  %v241_v7 = vld [vmem:[%s228_s21] sm:$0xff]  ;;  %p454_p13 = pnand %p453_p12, %p583_p4  ;;  %p458_p2 = scmp.lt.s32.totalorder %s456_s13, %s452_s18 }
  0x1a   : > { %v371_v3 = vsel %vm254_vm0, 1.0, %v517_v2 }
  0x1b   : > { %p455_p0 = pneg %p454_p13  ;;  %p459_p3 = por %p458_p2, %p457_p1 }
  0x1d   : > { %p460_p5 = pnand %p459_p3, %p455_p0 }
  0x21   : > { %260 = vperm.xlu0 %433, %v371_v3  }
  0x8b   : > { %v247_v6 = vpop.permute.xlu0 %246 }
  0x8c   : > { %vm248_vm1 = vcmp.eq.s32.totalorder %v434_v4, %v247_v6 }
  0x8d   : > { %v253_v8 = vsel %vm248_vm1, 0.9, %v435_v5 }
  0x8e   : > { %v257_v9 = vmul.f32 %v253_v8, %v241_v7 }
  0x93   : > { %v261_v10 = vpop.permute.xlu0 %260 }
  0x94   : > { %v263_v11 = vmul.f32 %v261_v10, %v257_v9 }
  0x96   : > { %267 = vst [vmem:[%s223_s6] sm:$0xff] %v263_v11 }
  0x97   : > { %463 = shalt.err (!%p460_p5)
}
  0x98   : > { %376 = dma.vmem_to_hbm [thread:$0]  (%p583_p4), %s282_s7, 128, %s284_s8, %s269_s30  }
  0x99 PF: > { %p382_p6 = scmp.ge.s32.totalorder %s514_s20, 2  ;;  %s295_s10 = sand.u32 1, %s494_s15  }
  0x9a   : > { %s296_s22 = scalar_lea.sflag [#allocation3], %s295_s10 }
  0x9b   : > { %p379_p7 = pnand %p382_p6, %p590_p8 }
  0x9d   : > { %p380_p9 = pneg %p379_p7 }
  0x9f   : > { %489 = dma.done.wait (%p380_p9), %s296_s22, 128  }
  0xa0   : > { %491 = vsyncadd (%p380_p9), %s296_s22, 4294967168  ;;  %s17_s20 = sadd.s32 1, %s514_s20   ;;  %s656_s15 = smov %s498_s16 }
  0xa1   : > { %p14_p10 = scmp.ge.s32.totalorder %s17_s20, 4   ;;  %s657_s16 = smov %s502_s17 }
  0xa2   : > { %s658_s17 = smov %s596_s28  ;;  %s659_s18 = smov %s510_s19 }
  0xa3   : > { %s660_s19 = smov %s662_s23  ;;  %16 = sbr.rel (!%p14_p10) target bundleno = 4 (0x4), region = 78 }
  0xa8   :  { %302 = vsyncpa [#allocation3], 1 }
  0xa9   :  { %304 = vsyncpa [#allocation3 + $0x1], 1 }

</bundles_post_ra>
